<compile_context>
chip_gen: v7x
topology: tpu7x:2x2x1
jax: 0.10.0
libtpu: 0.0.40
codegen_flags: <defaults>
</compile_context>

<pallas_src>
import functools

import jax
import jax.numpy as jnp
from jax import lax
from jax.experimental import pallas as pl
from jax.experimental.pallas import tpu as pltpu


def _round_up(a, b):
    return ((a + b - 1) // b) * b


def _focal_loss_kernel(logits_ref, target_ref, alpha_ref, out_ref, *,
                       gamma, hw, tile_hw, need_mask):
    """One grid step: a (Bn, C, tile_hw) slab covering Bn images' pixel tile.

    logits_ref : (Bn, C, tile_hw)  input dtype (upcast to f32 in-register)
    target_ref : (Bn, 1, tile_hw)  integer   (lane-dense targets)
    alpha_ref  : (1,  C, 1)        float32   (per-class weights; ones == no alpha)
    out_ref    : (1,  1, 128)      float32   (per-step partial loss sum, broadcast)
    """
    x = logits_ref[...].astype(jnp.float32)            # (Bn, C, T) pixels on lanes
    t = target_ref[...].astype(jnp.int32)              # (Bn, 1, T)

    # Numerically-stable softmax statistics over the class (sublane) axis.
    m = jnp.max(x, axis=1, keepdims=True)              # (Bn, 1, T)
    z = x - m
    e = jnp.exp(z)                                     # softmax numerators (EUP)
    s = jnp.sum(e, axis=1, keepdims=True)              # (Bn, 1, T)

    # Target gathers via compare + select (no float one-hot, no extra multiply).
    cls = lax.broadcasted_iota(jnp.int32, x.shape, 1)  # (Bn, C, T)
    hit = cls == t                                     # (Bn, C, T) bool
    z_t = jnp.sum(jnp.where(hit, z, 0.0), axis=1, keepdims=True)          # z[target]
    a_b = jnp.broadcast_to(alpha_ref[...].astype(jnp.float32), x.shape)   # (Bn, C, T)
    a_t = jnp.sum(jnp.where(hit, a_b, 0.0), axis=1, keepdims=True)        # alpha[target]

    logpt = z_t - jnp.log(s)                           # log p_t, (Bn, 1, T)

    g = float(gamma)
    if g == 0.0:
        loss = -(a_t * logpt)
    else:
        pt = jnp.exp(logpt)                            # EUP; replaces the e_t/s path
        q = jnp.maximum(1.0 - pt, 0.0)                 # clamp fp excursions above 1
        if g == 2.0:
            focal = q * q
        elif g.is_integer() and 0.0 < g <= 8.0:
            focal = q
            for _ in range(int(g) - 1):                # repeated mul, no pow
                focal = focal * q
        else:
            focal = q ** jnp.float32(g)
        loss = -focal * (a_t * logpt)                  # (Bn, 1, T)

    if need_mask:
        # Zero the out-of-bounds tail columns of the (unpadded) last pixel tile.
        p = pl.program_id(1)
        col = p * tile_hw + lax.broadcasted_iota(jnp.int32, loss.shape, 2)
        loss = jnp.where(col < hw, loss, 0.0)

    # Per-step partial sum, written as a lane-dense (1, 1, 128) block.
    out_ref[...] = jnp.broadcast_to(jnp.sum(loss), out_ref.shape).astype(jnp.float32)


def _step_budget_bytes():
    """Per-grid-step input byte budget (logits + targets), sized per generation."""
    try:
        vmem_bytes = int(pltpu.get_tpu_info().vmem_capacity_bytes)
    except Exception:
        vmem_bytes = None
    if vmem_bytes is not None and vmem_bytes <= 64 * 1024 * 1024:
        return 4 * 1024 * 1024     # v7x: 64 MiB physical VMEM -> smaller slabs
    return 6 * 1024 * 1024         # v5e / v6e: 128 MiB physical VMEM


def _pick_tiling(N, C, HW, logit_itemsize, target_itemsize, budget_bytes):
    """Choose (Bn images per step, tile_hw pixel lanes per step, grid_p)."""
    lane_bytes = C * logit_itemsize + target_itemsize        # bytes per pixel column
    hw_full = _round_up(HW, 128)
    lanes_budget = max(128, ((budget_bytes // lane_bytes) // 128) * 128)

    if lanes_budget >= hw_full:
        # One pixel tile covers the whole image: block multiple images per step.
        tile_hw = hw_full
        grid_p = 1
        bn_cap = max(1, min(N, budget_bytes // max(1, lane_bytes * tile_hw)))
        # Keep at least 2 total grid steps when possible (v7x has 2 TensorCores).
        if bn_cap >= N and N > 1:
            bn_cap = max(1, N // 2)
        bn = bn_cap
        while N % bn:                                         # largest divisor of N
            bn -= 1
        if N == 1 and hw_full >= 256:
            # Single image: split the pixel axis so both v7x cores get a step.
            tile_hw = _round_up(pl.cdiv(HW, 2), 128)
            grid_p = pl.cdiv(HW, tile_hw)
    else:
        bn = 1
        tile_hw = lanes_budget
        grid_p = pl.cdiv(HW, tile_hw)
    return bn, tile_hw, grid_p


def focal_loss(logits_nchw, target, *, gamma=2.0, alpha=None, size_average=True):
    """Pallas FocalLoss forward. logits_nchw: (N, C, H, W); target: (N, H, W) int."""
    N, C, H, W = logits_nchw.shape
    HW = H * W
    M = N * HW

    # Native layout: free reshapes only (no transpose, no pad, no extra HBM traffic).
    x = logits_nchw.reshape(N, C, HW)
    t = target.reshape(N, 1, HW)
    if (not jnp.issubdtype(t.dtype, jnp.integer)) or t.dtype.itemsize > 4:
        t = t.astype(jnp.int32)

    if alpha is None:
        alpha_vec = jnp.ones((C,), jnp.float32)               # no-op weighting
    elif isinstance(alpha, (float, int)):
        # PyTorch builds [alpha, 1 - alpha]; only meaningful for C == 2.
        assert C == 2, "scalar alpha implies binary classification (C == 2)"
        alpha_vec = jnp.array([alpha, 1.0 - alpha], jnp.float32)
    else:
        alpha_vec = jnp.asarray(alpha, jnp.float32).reshape(C)
    alpha_col = alpha_vec.reshape(1, C, 1)

    budget = _step_budget_bytes()
    bn, tile_hw, grid_p = _pick_tiling(N, C, HW, x.dtype.itemsize,
                                       t.dtype.itemsize, budget)
    grid_n = N // bn
    grid = (grid_n, grid_p)
    need_mask = (grid_p * tile_hw) != HW                      # OOB tail in last tile

    kernel = functools.partial(_focal_loss_kernel, gamma=float(gamma), hw=HW,
                               tile_hw=tile_hw, need_mask=need_mask)

    # TODO(synk): forward-only kernel; a custom_vjp backward must treat pt as
    # detached (as the PyTorch module does) if training support is added.
    # TODO(synk): if profiling shows exposed DMA at these tile sizes, add
    # pipeline_mode=pl.Buffered(3) on the logits BlockSpec.
    partials = pl.pallas_call(
        kernel,
        out_shape=jax.ShapeDtypeStruct((grid_n * grid_p, 1, 128), jnp.float32),
        grid_spec=pltpu.PrefetchScalarGridSpec(
            num_scalar_prefetch=0,
            grid=grid,
            in_specs=[
                pl.BlockSpec((bn, C, tile_hw), lambda g, p: (g, 0, p)),   # logits slab
                pl.BlockSpec((bn, 1, tile_hw), lambda g, p: (g, 0, p)),   # targets
                pl.BlockSpec((1, C, 1), lambda g, p: (0, 0, 0)),          # alpha (resident)
            ],
            out_specs=pl.BlockSpec((1, 1, 128),
                                   lambda g, p: (g * grid_p + p, 0, 0)),  # per-step partials
        ),
        compiler_params=pltpu.CompilerParams(
            dimension_semantics=("parallel", "parallel"),     # no serializing accumulator
            vmem_limit_bytes=32 * 1024 * 1024,                # explicit scoped-VMEM headroom
        ),
    )(x, t, alpha_col)

    total = jnp.sum(partials[:, 0, 0])
    if size_average:
        return total / jnp.float32(M)
    return total


def _reference_focal_loss(logits_nchw, target, gamma, alpha_vec, size_average):
    """Pure-JAX reference mirroring the PyTorch forward."""
    N, C, H, W = logits_nchw.shape
    x = logits_nchw.reshape(N, C, H * W).transpose(0, 2, 1).reshape(-1, C)
    t = target.reshape(-1)
    logp = jax.nn.log_softmax(x.astype(jnp.float32), axis=1)
    logpt = jnp.take_along_axis(logp, t[:, None], axis=1)[:, 0]
    pt = jnp.exp(logpt)
    if alpha_vec is not None:
        at = jnp.asarray(alpha_vec, jnp.float32)[t]
        logpt = logpt * at
    loss = -((1.0 - pt) ** gamma) * logpt
    return loss.mean() if size_average else loss.sum()


if __name__ == "__main__":
    key = jax.random.PRNGKey(0)
    k1, k2 = jax.random.split(key)

    N, C, H, W = 2, 4, 16, 16
    logits = jax.random.normal(k1, (N, C, H, W), dtype=jnp.float32)
    target = jax.random.randint(k2, (N, H, W), 0, C, dtype=jnp.int32)

    gamma = 2.0
    alpha = [0.1, 0.2, 0.3, 0.4]   # per-class weights (deterministic "params")

    out = focal_loss(logits, target, gamma=gamma, alpha=alpha, size_average=True)
    out = jax.block_until_ready(out)

    ref = _reference_focal_loss(logits, target, gamma, jnp.asarray(alpha), True)
    assert jnp.allclose(out, ref, rtol=1e-5, atol=1e-5), (out, ref)

    print("KERNEL_OK")
</pallas_src>

<mosaic_0001>
module attributes {stable_mosaic.version = 11 : i64} {
  func.func @_focal_loss_kernel(%arg0: i32, %arg1: i32, %arg2: memref<1x4x256xf32, #tpu.memory_space<vmem>>, %arg3: memref<1x1x256xi32, #tpu.memory_space<vmem>>, %arg4: memref<1x4x1xf32, #tpu.memory_space<vmem>>, %arg5: memref<1x1x128xf32, #tpu.memory_space<vmem>>) attributes {dimension_semantics = [#tpu.dimension_semantics<parallel>, #tpu.dimension_semantics<parallel>], iteration_bounds = array<i64: 2, 1>, scalar_prefetch = 0 : i64, scratch_operands = 0 : i64, tpu.core_type = #tpu.core_type<tc>, window_params = [{transform_indices = @transform_0, window_bounds = array<i64: 1, 4, 256>}, {transform_indices = @transform_1, window_bounds = array<i64: 1, 1, 256>}, {pipeline_mode = #tpu.pipeline_mode<synchronous>, transform_indices = @transform_2, window_bounds = array<i64: 1, 4, 1>}, {transform_indices = @transform_3, window_bounds = array<i64: 1, 1, 128>}]} {
    %c0 = arith.constant 0 : index
    %c0_0 = arith.constant 0 : index
    %c0_1 = arith.constant 0 : index
    %0 = vector.load %arg2[%c0, %c0_0, %c0_1] : memref<1x4x256xf32, #tpu.memory_space<vmem>>, vector<1x4x256xf32>
    %c0_2 = arith.constant 0 : index
    %c0_3 = arith.constant 0 : index
    %c0_4 = arith.constant 0 : index
    %1 = vector.load %arg3[%c0_2, %c0_3, %c0_4] : memref<1x1x256xi32, #tpu.memory_space<vmem>>, vector<1x1x256xi32>
    %cst = arith.constant dense<0xFF800000> : vector<1x256xf32>
    %2 = vector.multi_reduction <maximumf>, %0, %cst [1] : vector<1x4x256xf32> to vector<1x256xf32>
    %3 = vector.shape_cast %2 : vector<1x256xf32> to vector<1x1x256xf32>
    %4 = vector.broadcast %3 : vector<1x1x256xf32> to vector<1x4x256xf32>
    %5 = arith.subf %0, %4 : vector<1x4x256xf32>
    %6 = math.exp %5 : vector<1x4x256xf32>
    %cst_5 = arith.constant dense<0.000000e+00> : vector<1x256xf32>
    %7 = vector.multi_reduction <add>, %6, %cst_5 [1] : vector<1x4x256xf32> to vector<1x256xf32>
    %8 = vector.shape_cast %7 : vector<1x256xf32> to vector<1x1x256xf32>
    %9 = tpu.iota {dimensions = array<i32: 1>} : vector<1x4x256xi32>
    %10 = vector.broadcast %1 : vector<1x1x256xi32> to vector<1x4x256xi32>
    %11 = arith.cmpi eq, %9, %10 : vector<1x4x256xi32>
    %cst_6 = arith.constant 0.000000e+00 : f32
    %12 = vector.broadcast %cst_6 : f32 to vector<1x4x256xf32>
    %13 = arith.select %11, %5, %12 : vector<1x4x256xi1>, vector<1x4x256xf32>
    %cst_7 = arith.constant dense<0.000000e+00> : vector<1x256xf32>
    %14 = vector.multi_reduction <add>, %13, %cst_7 [1] : vector<1x4x256xf32> to vector<1x256xf32>
    %15 = vector.shape_cast %14 : vector<1x256xf32> to vector<1x1x256xf32>
    %c0_8 = arith.constant 0 : index
    %c0_9 = arith.constant 0 : index
    %c0_10 = arith.constant 0 : index
    %16 = vector.load %arg4[%c0_8, %c0_9, %c0_10] : memref<1x4x1xf32, #tpu.memory_space<vmem>>, vector<1x4x1xf32>
    %17 = vector.shape_cast %16 : vector<1x4x1xf32> to vector<1x4x1xf32>
    %18 = vector.broadcast %17 : vector<1x4x1xf32> to vector<1x4x256xf32>
    %cst_11 = arith.constant 0.000000e+00 : f32
    %19 = vector.broadcast %cst_11 : f32 to vector<1x4x256xf32>
    %20 = arith.select %11, %18, %19 : vector<1x4x256xi1>, vector<1x4x256xf32>
    %cst_12 = arith.constant dense<0.000000e+00> : vector<1x256xf32>
    %21 = vector.multi_reduction <add>, %20, %cst_12 [1] : vector<1x4x256xf32> to vector<1x256xf32>
    %22 = vector.shape_cast %21 : vector<1x256xf32> to vector<1x1x256xf32>
    %23 = math.log %8 : vector<1x1x256xf32>
    %24 = arith.subf %15, %23 : vector<1x1x256xf32>
    %25 = math.exp %24 : vector<1x1x256xf32>
    %cst_13 = arith.constant 1.000000e+00 : f32
    %26 = vector.broadcast %cst_13 : f32 to vector<1x1x256xf32>
    %27 = arith.subf %26, %25 : vector<1x1x256xf32>
    %cst_14 = arith.constant 0.000000e+00 : f32
    %28 = vector.broadcast %cst_14 : f32 to vector<1x1x256xf32>
    %29 = arith.maximumf %27, %28 : vector<1x1x256xf32>
    %30 = arith.mulf %29, %29 : vector<1x1x256xf32>
    %cst_15 = arith.constant 0.000000e+00 : f32
    %31 = vector.broadcast %cst_15 : f32 to vector<1x1x256xf32>
    %32 = arith.subf %31, %30 : vector<1x1x256xf32>
    %33 = arith.mulf %22, %24 : vector<1x1x256xf32>
    %34 = arith.mulf %32, %33 : vector<1x1x256xf32>
    %35 = vector.shape_cast %34 : vector<1x1x256xf32> to vector<1x1x1x256xf32>
    %cst_16 = arith.constant dense<0.000000e+00> : vector<1xf32>
    %36 = vector.multi_reduction <add>, %35, %cst_16 [1, 2, 3] : vector<1x1x1x256xf32> to vector<1xf32>
    %37 = vector.shape_cast %36 : vector<1xf32> to vector<1x1x1x1xf32>
    %38 = vector.extract %37[0, 0, 0, 0] : f32 from vector<1x1x1x1xf32>
    %39 = vector.broadcast %38 : f32 to vector<1x1x128xf32>
    %c0_17 = arith.constant 0 : index
    %c0_18 = arith.constant 0 : index
    %c0_19 = arith.constant 0 : index
    %40 = vector.load %arg5[%c0_17, %c0_18, %c0_19] : memref<1x1x128xf32, #tpu.memory_space<vmem>>, vector<1x1x128xf32>
    tpu.vector_store %arg5[%c0_17, %c0_18, %c0_19], %39 {strides = array<i32>} : memref<1x1x128xf32, #tpu.memory_space<vmem>>, vector<1x1x128xf32>,
    return
  }
  func.func @transform_0(%arg0: i32, %arg1: i32) -> (i32, i32, i32) {
    %c0_i32 = arith.constant 0 : i32
    %c0_i32_0 = arith.constant 0 : i32
    return %arg0, %c0_i32, %arg1 : i32, i32, i32
  }
  func.func @transform_1(%arg0: i32, %arg1: i32) -> (i32, i32, i32) {
    %c0_i32 = arith.constant 0 : i32
    %c0_i32_0 = arith.constant 0 : i32
    return %arg0, %c0_i32, %arg1 : i32, i32, i32
  }
  func.func @transform_2(%arg0: i32, %arg1: i32) -> (i32, i32, i32) {
    %c0_i32 = arith.constant 0 : i32
    %c0_i32_0 = arith.constant 0 : i32
    %c0_i32_1 = arith.constant 0 : i32
    %c0_i32_2 = arith.constant 0 : i32
    return %c0_i32, %c0_i32_0, %c0_i32_1 : i32, i32, i32
  }
  func.func @transform_3(%arg0: i32, %arg1: i32) -> (i32, i32, i32) {
    %c1_i32 = arith.constant 1 : i32
    %0 = arith.muli %arg0, %c1_i32 : i32
    %1 = arith.addi %0, %arg1 : i32
    %c0_i32 = arith.constant 0 : i32
    %c0_i32_0 = arith.constant 0 : i32
    %c0_i32_1 = arith.constant 0 : i32
    return %1, %c0_i32, %c0_i32_0 : i32, i32, i32
  }
}

</mosaic_0001>

<bundles_post_ra>
// kernel: tpu_custom_call.1
= control target key start
LH: loop header
LB: loop body
LE: loop exit
PB: predicated region body
PF: predicated region fallthrough
CT: control target
= control target key end

     0   :  { %8 = vsyncpa [#allocation3], 0  ;;  %s901_s0 = inlined_call_operand.hbm [shape: f32[2,4,256], index: 0, kind: input, shape index: {}]   ;;  %s902_s1 = inlined_call_operand.vmem [shape: s32[2,1,256], index: 1, kind: input, shape index: {}]   ;;  %s903_s2 = inlined_call_operand.vmem [shape: f32[1,4,1], index: 2, kind: input, shape index: {}]   ;;  %s904_s3 = inlined_call_operand.hbm [shape: f32[2,1,128], index: 3, kind: output, shape index: {}]  }
   0x1   :  { %10 = vsyncpa [#allocation3 + $0x1], 0 }
   0x2   :  { %11 = vsyncpa [#allocation4], 0 }
   0x3   :  { %13 = vsyncpa [#allocation4 + $0x1], 0  ;;  %s708_s12 = smov 0   ;;  %s710_s13 = smov 0  }
   0x4   :  { %s712_s14 = smov 0   ;;  %s714_s15 = smov 0  }
   0x5   :  { %s716_s16 = smov 0   ;;  %s718_s17 = smov 0  }
   0x6 LB: > { %s480_s18 = sadd.s32 4294967295, %s683_s17   ;;  %s481_s19 = sadd.s32 4294967294, %s683_s17   ;;  %s683_s17 = sphi %s718_s17, %s19_s17   ;;  %s679_s16 = sphi %s716_s16, %s920_s16   ;;  %s675_s15 = sphi %s714_s15, %s919_s15   ;;  %s671_s14 = sphi %s712_s14, %s918_s14   ;;  %s667_s13 = sphi %s710_s13, %s917_s13   ;;  %s663_s12 = sphi %s708_s12, %s916_s12  }
   0x7   : > { %s31_s20 = sadd.s32 1, %s679_s16  ;;  %s40_s21 = sadd.s32 1, %s671_s14 }
   0x8   : > { %p33_p0 = scmp.ge.s32.totalorder %s31_s20, 2  ;;  %p47_p1 = scmp.ne.s32.totalorder %s671_s14, %s667_s13 }
   0x9   : > { %p48_p2 = scmp.eq.s32.totalorder %s683_s17, 0  ;;  %p53_p3 = scmp.ne.s32.totalorder %s667_s13, %s663_s12 }
   0xa   : > { %s922_s20 = smov (%p33_p0, %s31_s20), 0  ;;  %p54_p5 = scmp.eq.s32.totalorder %s480_s18, 0 }
   0xb   : > { %p749_p4 = por %p48_p2, %p47_p1  ;;  %s35_s23 = ssub.s32 %s679_s16, %s922_s20 }
   0xc   : > { %p128_p6 = scmp.eq.s32.totalorder %s480_s18, 1  ;;  %p38_p7 = scmp.eq.s32.totalorder %s35_s23, 0 }
   0xd   : > { %p755_p8 = por %p54_p5, %p53_p3  ;;  %p134_p10 = scmp.eq.s32.totalorder %s481_s19, 1 }
   0xe   : > { %p759_p9 = por %p128_p6, %p47_p1  ;;  %p508_p13 = scmp.lt.s32.totalorder %s683_s17, 2 }
   0xf   : > { %s764_s26 = scalar_select %p38_p7, %s671_s14, %s40_s21  }
  0x10   : > { %s908_s25 = scalar_select %p759_p9, 1, 0 }
  0x11   : > { %p766_p11 = por %p134_p10, %p53_p3  ;;  %s157_s28 = sand.u32 1, %s671_s14  }
  0x12   : > { %s484_s29 = sshll.u32 %s157_s28, 3  ;;  %s493_s30 = sshll.u32 %s679_s16, 7 }
  0x13   : > { %s909_s27 = scalar_select %p766_p11, 1, 0 }
  0x14   : > { %s777_s6 = scalar_lea.hbm %s901_s0, %s493_s30  ;;  %s161_s7 = scalar_lea.vmem [#allocation2], %s484_s29 }
  0x15   : > { %s171_s8 = sshll.u32 %s161_s7, 4  ;;  %p783_p0 = pnand %p508_p13, %p749_p4  ;;  %s779_s8 = int_to_ptr.vmem [resolvable:$true] %s171_s8 }
  0x16   : > { %s158_s10 = scalar_lea.sflag [#allocation3], %s157_s28  ;;  %s571_s11 = scalar_lea.hbm %s777_s6, 128 }
  0x17   : > { %p572_p3 = scmp.ne.s32.totalorder %s777_s6, %s571_s11  ;;  %p573_p5 = pneg %p783_p0 }
  0x18   : > { %s576_s21 = scalar_lea.hbm %s901_s0, 256  ;;  %p577_p4 = scmp.lt.u32.totalorder %s777_s6, %s901_s0 }
  0x19   : > { %p574_p6 = pnand %p573_p5, %p572_p3  ;;  %p578_p10 = scmp.lt.u32.totalorder %s576_s21, %s571_s11 }
  0x1a   : > { %p580_p12 = scmp.lt.u32.totalorder %s571_s11, %s777_s6 }
  0x1b   : > { %p575_p7 = pneg %p574_p6  ;;  %p579_p13 = por %p578_p10, %p577_p4 }
  0x1d   : > { %p581_p1 = por %p580_p12, %p579_p13 }
  0x1f   : > { %p582_p2 = pnand %p581_p1, %p575_p7 }
  0x21   : > { %585 = shalt.err (!%p582_p2)
}
  0x22   : > { %s586_s28 = scalar_lea.vmem %s779_s8, 128  ;;  %s685_s29 = smov [#allocation2]  }
  0x23   : > { %p587_p3 = scmp.ne.s32.totalorder %s779_s8, %s586_s28  ;;  %s591_s30 = sshll.u32 %s685_s29, 4  ;;  %s592_s30 = int_to_ptr.vmem [resolvable:$false] %s591_s30 }
  0x24   : > { %s593_s4 = scalar_lea.vmem %s592_s30, 256  ;;  %p594_p9 = scmp.lt.s32.totalorder %s779_s8, %s592_s30 }
  0x25   : > { %p589_p6 = pnand %p587_p3, %p573_p5  ;;  %p595_p4 = scmp.lt.s32.totalorder %s593_s4, %s586_s28 }
  0x27   : > { %p590_p11 = pneg %p589_p6  ;;  %p596_p10 = por %p595_p4, %p594_p9 }
  0x29   : > { %p597_p12 = pnand %p596_p10, %p590_p11 }
  0x2b   : > { %600 = shalt.err (!%p597_p12)
}
  0x2c   : > { %503 = dma.hbm_to_vmem [thread:$0]  (!%p783_p0), %s777_s6, 128, %s779_s8, %s158_s10  }
  0x2d   : > { %p911_p1 = scmp.lt.s32.totalorder %s683_s17, 3  ;;  %p912_p2 = scmp.ge.s32.totalorder %s683_s17, 1 }
  0x2f   : > { %p189_p5 = pnand %p912_p2, %p911_p1 }
  0x30   : > { %s819_s5 = sand.u32 (!%p189_p5), 1, %s667_s13  }
  0x31   : > { %192 = sbr.rel (%p189_p5) target bundleno = 427 (0x1ab), region = 32  ;;  %s488_s7 = sshll.u32 (!%p189_p5), %s819_s5, 3 }
  0x32   : > { %s195_s11 = scalar_lea.sflag (!%p189_p5), [#allocation3], %s819_s5  ;;  %s198_s18 = scalar_lea.vmem (!%p189_p5), [#allocation2], %s488_s7 }
  0x38   : > { %654 = dma.done.wait (%p755_p8), %s195_s11, 128  }
  0x39   : > { %656 = vsyncadd (%p755_p8), %s195_s11, 4294967168  ;;  %v686_v0 = vmov 0   ;;  %v314_v1 = vld [vmem:[%s903_s2] sm:$0xf]  ;;  %vm244_vm0 = vcmask 1043456   ;;  %p230_p8 = scmp.lt.s32.totalorder %s675_s15, 1  ;;  %v283_v22 = vlaneseq }
  0x3a   : > { %559 = vset.pattern.permute.xlu0 %v686_v0  ;;  %v239_v2 = vld [vmem:[%s198_s18] sm:$0xff]  ;;  %vm358_vm3 = vcmask 1040384   ;;  %s227_s22 = scalar_lea.vmem [#allocation5], %s819_s5  ;;  %s490_s28 = sshll.u32 %s675_s15, 4 }
  0x3b   : > { %317 = vperm.xlu0 %559, %v314_v1   ;;  %v242_v3 = vcombine.high %v239_v2, %v239_v2  ;;  %v245_v4 = vsel %vm244_vm0, %v239_v2, -inf  ;;  %s231_s24 = scalar_select %p230_p8, %s675_s15, 1  ;;  %v284_v24 = vshrl.u32 %v283_v22, 7 }
  0x3c   : > { %v246_v6 = vrot.slane %v245_v4, 4  ;;  %s387_s23 = sshll.u32 %s227_s22, 4  ;;  %s854_s7 = scalar_lea.hbm %s904_s3, %s490_s28  ;;  %s849_s23 = int_to_ptr.vmem [resolvable:$true] %s387_s23 }
  0x3d   : > { %v252_v5 = vsel %vm244_vm0, %v242_v3, -inf  ;;  %s489_s9 = sshll.u32 %s231_s24, 1  ;;  %v287_v27 = vsub.s32 0, %v284_v24  ;;  %v291_v29 = vsub.s32 1, %v284_v24  ;;  %s374_s11 = scalar_lea.sflag [#allocation4], %s819_s5 }
  0x3e   : > { %v253_v7 = vrot.slane %v252_v5, 4  ;;  %v247_v8 = vmax.f32 %v245_v4, %v246_v6  ;;  %s236_s21 = scalar_lea.vmem %s902_s1, %s489_s9  ;;  %s601_s18 = scalar_lea.vmem %s849_s23, 16 }
  0x3f   : > { %v240_v30 = vld [vmem:[%s236_s21] sm:$0x3]  ;;  %p602_p9 = scmp.ne.s32.totalorder %s849_s23, %s601_s18  ;;  %p913_p11 = scmp.ne.s32.totalorder %s908_s25, 0 }
  0x40   : > { %v254_v9 = vmax.f32 %v252_v5, %v253_v7  ;;  %v248_v10 = vrot.slane %v247_v8, 2  ;;  %v288_v32 = vrot.slane %v240_v30, %v287_v27  ;;  %v292_v34 = vrot.slane %v240_v30, %v291_v29  ;;  %s687_s15 = smov [#allocation5]  }
  0x41   : > { %p603_p0 = pnand %p602_p9, %p913_p11  ;;  %s605_s6 = sshll.u32 %s687_s15, 4  ;;  %s606_s6 = int_to_ptr.vmem [resolvable:$false] %s605_s6 }
  0x42   : > { %v255_v11 = vrot.slane %v254_v9, 2  ;;  %v249_v12 = vmax.f32 %v247_v8, %v248_v10  ;;  %vm293_vm1 = vcmp.eq.s32.totalorder %v284_v24, %v288_v32  ;;  %vm294_vm2 = vcmp.eq.s32.totalorder %v284_v24, %v292_v34  ;;  %s607_s8 = scalar_lea.vmem %s606_s6, 32  ;;  %p608_p13 = scmp.lt.s32.totalorder %s849_s23, %s606_s6 }
  0x43   : > { %p604_p7 = pneg %p603_p0  ;;  %p609_p3 = scmp.lt.s32.totalorder %s607_s8, %s601_s18 }
  0x44   : > { %v256_v13 = vmax.f32 %v254_v9, %v255_v11  ;;  %v250_v14 = vrot.slane %v249_v12, 1 }
  0x45   : > { %p610_p6 = por %p609_p3, %p608_p13 }
  0x46   : > { %v257_v15 = vrot.slane %v256_v13, 1  ;;  %v251_v16 = vmax.f32 %v249_v12, %v250_v14 }
  0x47   : > { %p611_p4 = pnand %p610_p6, %p604_p7 }
  0x48   : > { %v258_v17 = vmax.f32 %v256_v13, %v257_v15 }
  0x4a   : > { %v261_v18 = vcombine.low %v251_v16, %v258_v17 }
  0x4c   : > { %v263_v19 = vsub.f32 %v239_v2, %v261_v18 }
  0x4e   : > { %v264_v20 = vmul.f32 1.442695, %v263_v19  ;;  %v296_v36 = vcombine.high %v263_v19, %v263_v19  ;;  %v298_v39 = vsel %vm293_vm1, %v263_v19, 0.0 }
  0x4f   : > { %v300_v43 = vsel %vm244_vm0, %v298_v39, 0.0 }
  0x50   : > { %561 = vpow2.f32 %v264_v20  ;;  %v299_v40 = vsel %vm294_vm2, %v296_v36, 0.0  ;;  %v301_v46 = vrot.slane %v300_v43, 4 }
  0x51   : > { %v307_v44 = vsel %vm244_vm0, %v299_v40, 0.0 }
  0x52   : > { %v308_v48 = vrot.slane %v307_v44, 4  ;;  %v302_v50 = vadd.f32 %v301_v46, %v300_v43 }
  0x54   : > { %v309_v52 = vadd.f32 %v308_v48, %v307_v44  ;;  %v303_v53 = vrot.slane %v302_v50, 2 }
  0x56   : > { %v310_v54 = vrot.slane %v309_v52, 2  ;;  %v304_v55 = vadd.f32 %v303_v53, %v302_v50 }
  0x58   : > { %v311_v56 = vadd.f32 %v310_v54, %v309_v52  ;;  %v305_v57 = vrot.slane %v304_v55, 1 }
  0x5a   : > { %v562_v21 = vpop.eup %561  ;;  %v312_v59 = vrot.slane %v311_v56, 1  ;;  %v306_v61 = vadd.f32 %v305_v57, %v304_v55 }
  0x5b   : > { %v267_v23 = vcombine.high %v562_v21, %v562_v21  ;;  %v269_v25 = vsel %vm244_vm0, %v562_v21, 0.0 }
  0x5c   : > { %v270_v28 = vrot.slane %v269_v25, 4  ;;  %v313_v63 = vadd.f32 %v312_v59, %v311_v56 }
  0x5d   : > { %v276_v26 = vsel %vm244_vm0, %v267_v23, 0.0 }
  0x5e   : > { %v277_v31 = vrot.slane %v276_v26, 4  ;;  %v271_v33 = vadd.f32 %v270_v28, %v269_v25 }
  0x60   : > { %v278_v35 = vadd.f32 %v277_v31, %v276_v26  ;;  %v272_v37 = vrot.slane %v271_v33, 2 }
  0x62   : > { %v279_v38 = vrot.slane %v278_v35, 2  ;;  %v273_v41 = vadd.f32 %v272_v37, %v271_v33 }
  0x64   : > { %v280_v42 = vadd.f32 %v279_v38, %v278_v35  ;;  %v274_v45 = vrot.slane %v273_v41, 1 }
  0x66   : > { %v281_v47 = vrot.slane %v280_v42, 1  ;;  %v275_v49 = vadd.f32 %v274_v45, %v273_v41 }
  0x68   : > { %v282_v51 = vadd.f32 %v281_v47, %v280_v42  ;;  %563 = vlog2.f32 %v275_v49 }
  0x6a   : > { %565 = vlog2.f32 %v282_v51 }
  0x72   : > { %v564_v58 = vpop.eup %563 }
  0x73   : > { %v337_v62 = vmul.f32 0.6931472, %v564_v58 }
  0x74   : > { %v566_v60 = vpop.eup %565 }
  0x75   : > { %v339_v0 = vmul.f32 0.6931472, %v566_v60  ;;  %v340_v1 = vsub.f32 %v306_v61, %v337_v62 }
  0x77   : > { %v341_v2 = vsub.f32 %v313_v63, %v339_v0  ;;  %v342_v3 = vmul.f32 1.442695, %v340_v1 }
  0x79   : > { %v344_v4 = vmul.f32 1.442695, %v341_v2  ;;  %567 = vpow2.f32 %v342_v3 }
  0x7b   : > { %569 = vpow2.f32 %v344_v4 }
  0x83   : > { %v568_v5 = vpop.eup %567 }
  0x84   : > { %v346_v10 = vsub.f32 1.0, %v568_v5 }
  0x85   : > { %v570_v6 = vpop.eup %569 }
  0x86   : > { %v347_v11 = vsub.f32 1.0, %v570_v6  ;;  %v348_v18 = vmax.f32 %v346_v10, 0.0 }
  0x88   : > { %v349_v19 = vmax.f32 %v347_v11, 0.0  ;;  %v350_v25 = vmul.f32 %v348_v18, %v348_v18 }
  0x8a   : > { %v351_v26 = vmul.f32 %v349_v19, %v349_v19  ;;  %v352_v30 = vsub.f32 0.0, %v350_v25 }
  0x8c   : > { %v353_v31 = vsub.f32 0.0, %v351_v26 }
  0xba   : > { %v318_v7 = vpop.permute.xlu0 %317 }
  0xbb   : > { %v320_v8 = vsel %vm293_vm1, %v318_v7, 0.0  ;;  %v321_v9 = vsel %vm294_vm2, %v318_v7, 0.0 }
  0xbc   : > { %v322_v12 = vsel %vm244_vm0, %v320_v8, 0.0  ;;  %v329_v13 = vsel %vm244_vm0, %v321_v9, 0.0 }
  0xbd   : > { %v323_v14 = vrot.slane %v322_v12, 4  ;;  %v330_v15 = vrot.slane %v329_v13, 4 }
  0xbf   : > { %v324_v16 = vadd.f32 %v323_v14, %v322_v12  ;;  %v331_v17 = vadd.f32 %v330_v15, %v329_v13 }
  0xc1   : > { %v325_v20 = vrot.slane %v324_v16, 2  ;;  %v332_v21 = vrot.slane %v331_v17, 2 }
  0xc3   : > { %v326_v22 = vadd.f32 %v325_v20, %v324_v16  ;;  %v333_v23 = vadd.f32 %v332_v21, %v331_v17 }
  0xc5   : > { %v327_v24 = vrot.slane %v326_v22, 1  ;;  %v334_v27 = vrot.slane %v333_v23, 1 }
  0xc7   : > { %v328_v28 = vadd.f32 %v327_v24, %v326_v22  ;;  %v335_v29 = vadd.f32 %v334_v27, %v333_v23 }
  0xc9   : > { %v354_v32 = vmul.f32 %v340_v1, %v328_v28  ;;  %v355_v33 = vmul.f32 %v341_v2, %v335_v29 }
  0xcb   : > { %v356_v34 = vmul.f32 %v354_v32, %v352_v30  ;;  %v357_v35 = vmul.f32 %v355_v33, %v353_v31 }
  0xcd   : > { %v359_v36 = vsel %vm358_vm3, %v356_v34, 0.0  ;;  %v360_v37 = vsel %vm358_vm3, %v357_v35, 0.0 }
  0xce   : > { %v361_v38 = vadd.f32 %v360_v37, %v359_v36 }
  0xd0   : > { %362 = vadd.xlane.f32.xlu0 %v361_v38 }
 0x15d   : > { %v363_v39 = vpop.xlane.xlu0 %362 }
 0x15e   : > { %v364_v40 = vrot.slane %v363_v39, 4 }
 0x160   : > { %v365_v41 = vadd.f32 %v364_v40, %v363_v39 }
 0x162   : > { %v366_v42 = vrot.slane %v365_v41, 2 }
 0x164   : > { %v367_v43 = vadd.f32 %v366_v42, %v365_v41 }
 0x166   : > { %v368_v44 = vrot.slane %v367_v43, 1 }
 0x168   : > { %v369_v45 = vadd.f32 %v368_v44, %v367_v43 }
 0x16a   : > { %494 = vpush %v369_v45 }
 0x19b   : > { %s495_s29 = spop %494 }
 0x19c   : > { %v371_v46 = vstv %s495_s29 }
 0x19d   : > { %372 = vst [vmem:[%s227_s22] sm:$0x1] %v371_v46 }
 0x19e   : > { %614 = shalt.err (!%p611_p4)
}
 0x19f   : > { %s615_s5 = scalar_lea.hbm %s854_s7, 16  ;;  %s619_s10 = scalar_lea.hbm %s904_s3, 32 }
 0x1a0   : > { %p616_p10 = scmp.ne.s32.totalorder %s854_s7, %s615_s5  ;;  %p620_p2 = scmp.lt.u32.totalorder %s854_s7, %s904_s3 }
 0x1a1   : > { %p621_p5 = scmp.lt.u32.totalorder %s619_s10, %s615_s5  ;;  %p623_p9 = scmp.lt.u32.totalorder %s615_s5, %s854_s7 }
 0x1a2   : > { %p617_p12 = pnand %p616_p10, %p913_p11 }
 0x1a3   : > { %p622_p8 = por %p621_p5, %p620_p2 }
 0x1a4   : > { %p618_p1 = pneg %p617_p12 }
 0x1a5   : > { %p624_p0 = por %p623_p9, %p622_p8 }
 0x1a7   : > { %p625_p7 = pnand %p624_p0, %p618_p1 }
 0x1a9   : > { %628 = shalt.err (!%p625_p7)
}
 0x1aa   : > { %498 = dma.vmem_to_hbm [thread:$0]  (%p913_p11), %s849_s23, 16, %s854_s7, %s374_s11  }
 0x1ab PF: > { %s399_s22 = sand.u32 1, %s663_s12   ;;  %p914_p13 = scmp.ne.s32.totalorder %s909_s27, 0 }
 0x1ac   : > { %p915_p3 = scmp.ge.s32.totalorder %s683_s17, 2  ;;  %s400_s28 = scalar_lea.sflag [#allocation4], %s399_s22 }
 0x1ae   : > { %p505_p6 = pnand %p915_p3, %p914_p13 }
 0x1b0   : > { %658 = dma.done.wait (!%p505_p6), %s400_s28, 16  }
 0x1b1   : > { %660 = vsyncadd (!%p505_p6), %s400_s28, 4294967280  ;;  %s19_s17 = sadd.s32 1, %s683_s17   ;;  %s916_s12 = smov %s667_s13 }
 0x1b2   : > { %p16_p4 = scmp.ge.s32.totalorder %s19_s17, 4   ;;  %s917_s13 = smov %s671_s14 }
 0x1b3   : > { %s918_s14 = smov %s764_s26  ;;  %s919_s15 = smov %s679_s16 }
 0x1b4   : > { %s920_s16 = smov %s922_s20  ;;  %18 = sbr.rel (!%p16_p4) target bundleno = 6 (0x6), region = 80 }
 0x1bb   :  { %404 = vsyncpa [#allocation3], 1 }
 0x1bc   :  { %406 = vsyncpa [#allocation3 + $0x1], 1 }
 0x1bd   :  { %407 = vsyncpa [#allocation4], 1 }
 0x1be   :  { %409 = vsyncpa [#allocation4 + $0x1], 1 }

</bundles_post_ra>
